<compile_context>
chip_gen: v7x
topology: tpu7x:2x2x1
jax: 0.10.0
libtpu: 0.0.40
codegen_flags: <defaults>
</compile_context>

<pallas_src>
import jax
import jax.numpy as jnp
from jax.experimental import pallas as pl
from jax.experimental.pallas import tpu as pltpu

H1, H2, C = 256, 128, 2
C_PAD = 128  # lane-dense padded class dimension used for compute only


def mlp_softmax_kernel(x_ref, w1_ref, b1_ref, w2_ref, b2_ref, w3_ref, b3_ref, o_ref):
    # x arrives as f32; cast to the matmul dtype in-kernel (VPU pack, hidden
    # under MXU/DMA slack) so the wrapper never runs a standalone cast pass.
    x = x_ref[...].astype(w1_ref.dtype)

    # hidden1: [bm, D] @ [D, 256] on the MXU (f32 accumulate), f32 bias-add,
    # no activation (matches the PyTorch module).
    h1 = jnp.dot(x, w1_ref[...], preferred_element_type=jnp.float32) + b1_ref[...]

    # hidden2: [bm, 256] @ [256, 128] + bias, ReLU (f32 elementwise).
    h2 = jnp.dot(h1.astype(w2_ref.dtype), w2_ref[...],
                 preferred_element_type=jnp.float32)
    h2 = jnp.maximum(h2 + b2_ref[...], 0.0)

    # output layer, padded to 128 lanes: [bm, 128] @ [128, 128] + padded bias.
    logits = jnp.dot(h2.astype(w3_ref.dtype), w3_ref[...],
                     preferred_element_type=jnp.float32)
    logits = logits + b3_ref[...]  # padded columns carry -1e30 (f32) -> exp == 0

    # numerically stable softmax over the padded 128-lane class axis.
    m = jnp.max(logits, axis=1, keepdims=True)
    e = jnp.exp(logits - m)
    denom = jnp.sum(e, axis=1, keepdims=True)
    probs = e * pl.reciprocal(denom, approx=True)  # EUP slot, otherwise idle

    # Narrow store: only the 2 real classes go back to HBM ([block_b, 2] tile).
    o_ref[...] = probs[:, :C].astype(o_ref.dtype)


def _choose_block_b(B, *, max_block=2048, min_block=256):
    """Batch tile: multiple of 8, divides B, sized so that
       * there are >= 2 (ideally ~4) grid steps -> x/out DMA overlaps compute
         and both v7x TensorCores get work,
       * the tile is capped at 2048 rows (v7x 64 MiB VMEM headroom),
       * degenerate tiny tiles (per-step overhead dominated) are avoided."""
    if B % 8 != 0 or B <= max(min_block, 8):
        return B
    upper = min(max_block, B // 2)
    divisors = [d for d in range(8, upper + 1, 8) if B % d == 0]
    if not divisors:
        return B
    goal = max(B // 4, min_block)          # aim for ~4 grid steps
    good = [d for d in divisors if min_block <= d <= goal]
    if good:
        return good[-1]
    largest = divisors[-1]
    return largest if largest >= min_block else B  # no decent divisor -> one block


def _vmem_limit(block_b, D, *, use_bf16):
    """Derive a VMEM budget from the actual tile sizes (valid on 64 MiB v7x)."""
    wdt = 2 if use_bf16 else 4
    weights = (D * H1 + H1 * H2 + H2 * C_PAD) * wdt + (H1 + H2 + C_PAD) * 4
    streams = 2 * block_b * (D + C) * 4                      # double-buffered x / out
    interm = block_b * (H1 + H2 + 3 * C_PAD) * 4 + block_b * (H1 + H2) * wdt
    total = weights + streams + interm
    return int(min(max(2 * total, 16 << 20), 64 << 20))      # 2x slack, clamp


def _basic_dnn_forward(x, params, *, block_b, use_bf16, single_buffer_weights):
    B, D = x.shape
    if x.dtype != jnp.float32:
        x = x.astype(jnp.float32)
    if block_b is None:
        block_b = _choose_block_b(B)
    assert B % block_b == 0, "block_b must evenly divide the batch"
    assert block_b == B or block_b % 8 == 0, (
        "block_b must be a multiple of 8 (f32 sublane) unless it equals B")

    compute_dtype = jnp.bfloat16 if use_bf16 else jnp.float32

    # One-time weight casts in the wrapper (tiny); x stays f32, cast in-kernel.
    w1 = params["w1"].astype(compute_dtype)
    w2 = params["w2"].astype(compute_dtype)
    b1 = params["b1"].reshape(1, H1).astype(jnp.float32)
    b2 = params["b2"].reshape(1, H2).astype(jnp.float32)

    # Pad output layer to a lane-dense 128-wide class dimension (compute only).
    w3p = jnp.zeros((H2, C_PAD), compute_dtype).at[:, :C].set(
        params["w3"].astype(compute_dtype))
    b3p = jnp.full((1, C_PAD), -1e30, jnp.float32).at[0, :C].set(
        params["b3"].astype(jnp.float32))

    def _resident(shape):
        # Constant index_map: fetched once, stays VMEM-resident across the grid.
        # Single-buffered (never revisited) to halve its VMEM footprint.
        if single_buffer_weights:
            return pl.BlockSpec(shape, lambda i: (0, 0),
                                pipeline_mode=pl.Buffered(1))
        return pl.BlockSpec(shape, lambda i: (0, 0))

    grid = (B // block_b,)

    cost = pl.CostEstimate(
        flops=2 * B * (D * H1 + H1 * H2 + H2 * C_PAD),
        transcendentals=B * C_PAD,
        bytes_accessed=int(
            B * D * 4                                           # x (f32 in)
            + (D * H1 + H1 * H2 + H2 * C_PAD) * w1.dtype.itemsize
            + (H1 + H2 + C_PAD) * 4                             # biases
            + B * C * 4))                                       # [B, 2] out

    return pl.pallas_call(
        mlp_softmax_kernel,
        out_shape=jax.ShapeDtypeStruct((B, C), jnp.float32),
        grid_spec=pltpu.PrefetchScalarGridSpec(
            num_scalar_prefetch=0,
            grid=grid,
            in_specs=[
                pl.BlockSpec((block_b, D), lambda i: (i, 0)),   # x tile (f32)
                _resident((D, H1)),                             # w1
                _resident((1, H1)),                             # b1
                _resident((H1, H2)),                            # w2
                _resident((1, H2)),                             # b2
                _resident((H2, C_PAD)),                         # w3 (padded)
                _resident((1, C_PAD)),                          # b3 (padded, f32)
            ],
            out_specs=pl.BlockSpec((block_b, C), lambda i: (i, 0)),
        ),
        compiler_params=pltpu.CompilerParams(
            dimension_semantics=("parallel",),
            vmem_limit_bytes=_vmem_limit(block_b, D, use_bf16=use_bf16),
        ),
        cost_estimate=cost,
    )(x, w1, b1, w2, b2, w3p, b3p)


def basic_dnn_forward(x, params, *, block_b=None, use_bf16=True,
                      single_buffer_weights=True):
    """x: [B, D] float32. params: dict of w1,b1,w2,b2,w3,b3 (jax layout [in,out]).
    Returns [B, 2] softmax probabilities."""
    try:
        return _basic_dnn_forward(x, params, block_b=block_b, use_bf16=use_bf16,
                                  single_buffer_weights=single_buffer_weights)
    except Exception:
        if not single_buffer_weights:
            raise
        # Some JAX builds reject pipeline_mode=pl.Buffered(1) on pallas_call
        # BlockSpecs; fall back to default double-buffering (only costs a few
        # hundred KiB of extra VMEM for these weight shapes).
        return _basic_dnn_forward(x, params, block_b=block_b, use_bf16=use_bf16,
                                  single_buffer_weights=False)


def init_params(key, in_features):
    """Deterministic init mimicking torch.nn.Linear default (uniform +-1/sqrt(fan_in)).
    Weights stored transposed vs torch: [in, out]."""
    dims = [(in_features, H1), (H1, H2), (H2, C)]
    params = {}
    for idx, (fan_in, fan_out) in enumerate(dims, start=1):
        key, kw, kb = jax.random.split(key, 3)
        bound = 1.0 / jnp.sqrt(jnp.float32(fan_in))
        params[f"w{idx}"] = jax.random.uniform(
            kw, (fan_in, fan_out), jnp.float32, -bound, bound)
        params[f"b{idx}"] = jax.random.uniform(
            kb, (fan_out,), jnp.float32, -bound, bound)
    return params


def reference_forward(x, params):
    h1 = x @ params["w1"] + params["b1"]
    h2 = h1 @ params["w2"] + params["b2"]
    h2 = jnp.maximum(h2, 0.0)
    logits = h2 @ params["w3"] + params["b3"]
    return jax.nn.softmax(logits, axis=1)


if __name__ == "__main__":
    # TODO(synk): only the forward pass is implemented; Adam/fit/metrics from the
    # PyTorch module are training/host-side logic, not kernel work.
    B, D = 8, 32  # small batch, X.shape[1] = 32 features
    key = jax.random.PRNGKey(0)
    key, kx = jax.random.split(key)
    x = jax.random.normal(kx, (B, D), jnp.float32)
    params = init_params(key, D)

    ref = reference_forward(x, params)

    # float32 matmul path: tight check (only approx-reciprocal slack).
    out_f32 = jax.block_until_ready(basic_dnn_forward(x, params, use_bf16=False))
    assert out_f32.shape == (B, C)
    assert jnp.allclose(out_f32, ref, atol=2e-3, rtol=2e-3), "f32 mismatch vs reference"
    assert jnp.allclose(jnp.sum(out_f32, axis=1), jnp.ones(B), atol=2e-3)

    # bf16 matmul path (default; MXU-native on all chips): looser tolerance.
    out_bf16 = jax.block_until_ready(basic_dnn_forward(x, params))
    assert out_bf16.shape == (B, C)
    assert jnp.allclose(out_bf16, ref, atol=3e-2, rtol=3e-2), "bf16 mismatch vs reference"
    assert jnp.allclose(jnp.sum(out_bf16, axis=1), jnp.ones(B), atol=3e-2)

    # Multi-step grid path (still small: 1024x32): exercises batch tiling / pipelining.
    key, kx2 = jax.random.split(key)
    x_big = jax.random.normal(kx2, (1024, D), jnp.float32)
    ref_big = reference_forward(x_big, params)
    out_big = jax.block_until_ready(basic_dnn_forward(x_big, params))
    assert out_big.shape == (1024, C)
    assert jnp.allclose(out_big, ref_big, atol=3e-2, rtol=3e-2), "tiled mismatch vs reference"

    print("KERNEL_OK")
</pallas_src>

<mosaic_0001>
module attributes {stable_mosaic.version = 11 : i64} {
  func.func @mlp_softmax_kernel(%arg0: i32, %arg1: memref<8x32xf32, #tpu.memory_space<vmem>>, %arg2: memref<32x256xf32, #tpu.memory_space<vmem>>, %arg3: memref<1x256xf32, #tpu.memory_space<vmem>>, %arg4: memref<256x128xf32, #tpu.memory_space<vmem>>, %arg5: memref<1x128xf32, #tpu.memory_space<vmem>>, %arg6: memref<128x128xf32, #tpu.memory_space<vmem>>, %arg7: memref<1x128xf32, #tpu.memory_space<vmem>>, %arg8: memref<8x2xf32, #tpu.memory_space<vmem>>) attributes {dimension_semantics = [#tpu.dimension_semantics<parallel>], iteration_bounds = array<i64: 1>, scalar_prefetch = 0 : i64, scratch_operands = 0 : i64, tpu.core_type = #tpu.core_type<tc>, window_params = [{transform_indices = @transform_0, window_bounds = array<i64: 8, 32>}, {pipeline_mode = #tpu.pipeline_mode<synchronous>, transform_indices = @transform_1, window_bounds = array<i64: 32, 256>}, {pipeline_mode = #tpu.pipeline_mode<synchronous>, transform_indices = @transform_2, window_bounds = array<i64: 1, 256>}, {pipeline_mode = #tpu.pipeline_mode<synchronous>, transform_indices = @transform_3, window_bounds = array<i64: 256, 128>}, {pipeline_mode = #tpu.pipeline_mode<synchronous>, transform_indices = @transform_4, window_bounds = array<i64: 1, 128>}, {pipeline_mode = #tpu.pipeline_mode<synchronous>, transform_indices = @transform_5, window_bounds = array<i64: 128, 128>}, {pipeline_mode = #tpu.pipeline_mode<synchronous>, transform_indices = @transform_6, window_bounds = array<i64: 1, 128>}, {transform_indices = @transform_7, window_bounds = array<i64: 8, 2>}]} {
    %c0 = arith.constant 0 : index
    %c0_0 = arith.constant 0 : index
    %0 = vector.load %arg1[%c0, %c0_0] : memref<8x32xf32, #tpu.memory_space<vmem>>, vector<8x32xf32>
    %c0_1 = arith.constant 0 : index
    %c0_2 = arith.constant 0 : index
    %1 = vector.load %arg2[%c0_1, %c0_2] : memref<32x256xf32, #tpu.memory_space<vmem>>, vector<32x256xf32>
    %cst = arith.constant dense<0.000000e+00> : vector<8x256xf32>
    %2 = tpu.matmul %0, %1, %cst {dimension_numbers = #tpu.dot_dimension_numbers<[1], [0], [0], [1], [0, 0, 1, 1], [], []>} : vector<8x32xf32>, vector<32x256xf32>, vector<8x256xf32> -> vector<8x256xf32>
    %c0_3 = arith.constant 0 : index
    %c0_4 = arith.constant 0 : index
    %3 = vector.load %arg3[%c0_3, %c0_4] : memref<1x256xf32, #tpu.memory_space<vmem>>, vector<1x256xf32>
    %4 = vector.broadcast %3 : vector<1x256xf32> to vector<8x256xf32>
    %5 = arith.addf %2, %4 : vector<8x256xf32>
    %c0_5 = arith.constant 0 : index
    %c0_6 = arith.constant 0 : index
    %6 = vector.load %arg4[%c0_5, %c0_6] : memref<256x128xf32, #tpu.memory_space<vmem>>, vector<256x128xf32>
    %cst_7 = arith.constant dense<0.000000e+00> : vector<8x128xf32>
    %7 = tpu.matmul %5, %6, %cst_7 {dimension_numbers = #tpu.dot_dimension_numbers<[1], [0], [0], [1], [0, 0, 1, 1], [], []>} : vector<8x256xf32>, vector<256x128xf32>, vector<8x128xf32> -> vector<8x128xf32>
    %c0_8 = arith.constant 0 : index
    %c0_9 = arith.constant 0 : index
    %8 = vector.load %arg5[%c0_8, %c0_9] : memref<1x128xf32, #tpu.memory_space<vmem>>, vector<1x128xf32>
    %9 = vector.broadcast %8 : vector<1x128xf32> to vector<8x128xf32>
    %10 = arith.addf %7, %9 : vector<8x128xf32>
    %cst_10 = arith.constant 0.000000e+00 : f32
    %11 = vector.broadcast %cst_10 : f32 to vector<8x128xf32>
    %12 = arith.maximumf %10, %11 : vector<8x128xf32>
    %c0_11 = arith.constant 0 : index
    %c0_12 = arith.constant 0 : index
    %13 = vector.load %arg6[%c0_11, %c0_12] : memref<128x128xf32, #tpu.memory_space<vmem>>, vector<128x128xf32>
    %cst_13 = arith.constant dense<0.000000e+00> : vector<8x128xf32>
    %14 = tpu.matmul %12, %13, %cst_13 {dimension_numbers = #tpu.dot_dimension_numbers<[1], [0], [0], [1], [0, 0, 1, 1], [], []>} : vector<8x128xf32>, vector<128x128xf32>, vector<8x128xf32> -> vector<8x128xf32>
    %c0_14 = arith.constant 0 : index
    %c0_15 = arith.constant 0 : index
    %15 = vector.load %arg7[%c0_14, %c0_15] : memref<1x128xf32, #tpu.memory_space<vmem>>, vector<1x128xf32>
    %16 = vector.broadcast %15 : vector<1x128xf32> to vector<8x128xf32>
    %17 = arith.addf %14, %16 : vector<8x128xf32>
    %cst_16 = arith.constant dense<0xFF800000> : vector<8xf32>
    %18 = vector.multi_reduction <maximumf>, %17, %cst_16 [1] : vector<8x128xf32> to vector<8xf32>
    %19 = vector.shape_cast %18 : vector<8xf32> to vector<8x1xf32>
    %20 = vector.broadcast %19 : vector<8x1xf32> to vector<8x128xf32>
    %21 = arith.subf %17, %20 : vector<8x128xf32>
    %22 = math.exp %21 : vector<8x128xf32>
    %cst_17 = arith.constant dense<0.000000e+00> : vector<8xf32>
    %23 = vector.multi_reduction <add>, %22, %cst_17 [1] : vector<8x128xf32> to vector<8xf32>
    %24 = vector.shape_cast %23 : vector<8xf32> to vector<8x1xf32>
    %25 = tpu.reciprocal %24 {approx = true} : vector<8x1xf32> -> vector<8x1xf32>
    %26 = vector.broadcast %25 : vector<8x1xf32> to vector<8x128xf32>
    %27 = arith.mulf %22, %26 : vector<8x128xf32>
    %28 = vector.extract_strided_slice %27 {offsets = [0, 0], sizes = [8, 2], strides = [1, 1]} : vector<8x128xf32> to vector<8x2xf32>
    %c0_18 = arith.constant 0 : index
    %c0_19 = arith.constant 0 : index
    %29 = vector.load %arg8[%c0_18, %c0_19] : memref<8x2xf32, #tpu.memory_space<vmem>>, vector<8x2xf32>
    tpu.vector_store %arg8[%c0_18, %c0_19], %28 {strides = array<i32>} : memref<8x2xf32, #tpu.memory_space<vmem>>, vector<8x2xf32>,
    return
  }
  func.func @transform_0(%arg0: i32) -> (i32, i32) {
    %c0_i32 = arith.constant 0 : i32
    %c0_i32_0 = arith.constant 0 : i32
    return %arg0, %c0_i32 : i32, i32
  }
  func.func @transform_1(%arg0: i32) -> (i32, i32) {
    %c0_i32 = arith.constant 0 : i32
    %c0_i32_0 = arith.constant 0 : i32
    %c0_i32_1 = arith.constant 0 : i32
    return %c0_i32, %c0_i32_0 : i32, i32
  }
  func.func @transform_2(%arg0: i32) -> (i32, i32) {
    %c0_i32 = arith.constant 0 : i32
    %c0_i32_0 = arith.constant 0 : i32
    %c0_i32_1 = arith.constant 0 : i32
    return %c0_i32, %c0_i32_0 : i32, i32
  }
  func.func @transform_3(%arg0: i32) -> (i32, i32) {
    %c0_i32 = arith.constant 0 : i32
    %c0_i32_0 = arith.constant 0 : i32
    %c0_i32_1 = arith.constant 0 : i32
    return %c0_i32, %c0_i32_0 : i32, i32
  }
  func.func @transform_4(%arg0: i32) -> (i32, i32) {
    %c0_i32 = arith.constant 0 : i32
    %c0_i32_0 = arith.constant 0 : i32
    %c0_i32_1 = arith.constant 0 : i32
    return %c0_i32, %c0_i32_0 : i32, i32
  }
  func.func @transform_5(%arg0: i32) -> (i32, i32) {
    %c0_i32 = arith.constant 0 : i32
    %c0_i32_0 = arith.constant 0 : i32
    %c0_i32_1 = arith.constant 0 : i32
    return %c0_i32, %c0_i32_0 : i32, i32
  }
  func.func @transform_6(%arg0: i32) -> (i32, i32) {
    %c0_i32 = arith.constant 0 : i32
    %c0_i32_0 = arith.constant 0 : i32
    %c0_i32_1 = arith.constant 0 : i32
    return %c0_i32, %c0_i32_0 : i32, i32
  }
  func.func @transform_7(%arg0: i32) -> (i32, i32) {
    %c0_i32 = arith.constant 0 : i32
    %c0_i32_0 = arith.constant 0 : i32
    return %arg0, %c0_i32 : i32, i32
  }
}

module attributes {stable_mosaic.version = 11 : i64} {
  func.func @mlp_softmax_kernel(%arg0: i32, %arg1: memref<8x32xf32, #tpu.memory_space<vmem>>, %arg2: memref<32x256xf32, #tpu.memory_space<vmem>>, %arg3: memref<1x256xf32, #tpu.memory_space<vmem>>, %arg4: memref<256x128xf32, #tpu.memory_space<vmem>>, %arg5: memref<1x128xf32, #tpu.memory_space<vmem>>, %arg6: memref<128x128xf32, #tpu.memory_space<vmem>>, %arg7: memref<1x128xf32, #tpu.memory_space<vmem>>, %arg8: memref<8x2xf32, #tpu.memory_space<vmem>>) attributes {dimension_semantics = [#tpu.dimension_semantics<parallel>], iteration_bounds = array<i64: 1>, scalar_prefetch = 0 : i64, scratch_operands = 0 : i64, tpu.core_type = #tpu.core_type<tc>, window_params = [{transform_indices = @transform_0, window_bounds = array<i64: 8, 32>}, {pipeline_mode = #tpu.pipeline_mode<synchronous>, transform_indices = @transform_1, window_bounds = array<i64: 32, 256>}, {pipeline_mode = #tpu.pipeline_mode<synchronous>, transform_indices = @transform_2, window_bounds = array<i64: 1, 256>}, {pipeline_mode = #tpu.pipeline_mode<synchronous>, transform_indices = @transform_3, window_bounds = array<i64: 256, 128>}, {pipeline_mode = #tpu.pipeline_mode<synchronous>, transform_indices = @transform_4, window_bounds = array<i64: 1, 128>}, {pipeline_mode = #tpu.pipeline_mode<synchronous>, transform_indices = @transform_5, window_bounds = array<i64: 128, 128>}, {pipeline_mode = #tpu.pipeline_mode<synchronous>, transform_indices = @transform_6, window_bounds = array<i64: 1, 128>}, {transform_indices = @transform_7, window_bounds = array<i64: 8, 2>}]} {
    %c0 = arith.constant 0 : index
    %c0_0 = arith.constant 0 : index
    %0 = vector.load %arg1[%c0, %c0_0] : memref<8x32xf32, #tpu.memory_space<vmem>>, vector<8x32xf32>
    %c0_1 = arith.constant 0 : index
    %c0_2 = arith.constant 0 : index
    %1 = vector.load %arg2[%c0_1, %c0_2] : memref<32x256xf32, #tpu.memory_space<vmem>>, vector<32x256xf32>
    %cst = arith.constant dense<0.000000e+00> : vector<8x256xf32>
    %2 = tpu.matmul %0, %1, %cst {dimension_numbers = #tpu.dot_dimension_numbers<[1], [0], [0], [1], [0, 0, 1, 1], [], []>} : vector<8x32xf32>, vector<32x256xf32>, vector<8x256xf32> -> vector<8x256xf32>
    %c0_3 = arith.constant 0 : index
    %c0_4 = arith.constant 0 : index
    %3 = vector.load %arg3[%c0_3, %c0_4] : memref<1x256xf32, #tpu.memory_space<vmem>>, vector<1x256xf32>
    %4 = vector.broadcast %3 : vector<1x256xf32> to vector<8x256xf32>
    %5 = arith.addf %2, %4 : vector<8x256xf32>
    %c0_5 = arith.constant 0 : index
    %c0_6 = arith.constant 0 : index
    %6 = vector.load %arg4[%c0_5, %c0_6] : memref<256x128xf32, #tpu.memory_space<vmem>>, vector<256x128xf32>
    %cst_7 = arith.constant dense<0.000000e+00> : vector<8x128xf32>
    %7 = tpu.matmul %5, %6, %cst_7 {dimension_numbers = #tpu.dot_dimension_numbers<[1], [0], [0], [1], [0, 0, 1, 1], [], []>} : vector<8x256xf32>, vector<256x128xf32>, vector<8x128xf32> -> vector<8x128xf32>
    %c0_8 = arith.constant 0 : index
    %c0_9 = arith.constant 0 : index
    %8 = vector.load %arg5[%c0_8, %c0_9] : memref<1x128xf32, #tpu.memory_space<vmem>>, vector<1x128xf32>
    %9 = vector.broadcast %8 : vector<1x128xf32> to vector<8x128xf32>
    %10 = arith.addf %7, %9 : vector<8x128xf32>
    %cst_10 = arith.constant 0.000000e+00 : f32
    %11 = vector.broadcast %cst_10 : f32 to vector<8x128xf32>
    %12 = arith.maximumf %10, %11 : vector<8x128xf32>
    %c0_11 = arith.constant 0 : index
    %c0_12 = arith.constant 0 : index
    %13 = vector.load %arg6[%c0_11, %c0_12] : memref<128x128xf32, #tpu.memory_space<vmem>>, vector<128x128xf32>
    %cst_13 = arith.constant dense<0.000000e+00> : vector<8x128xf32>
    %14 = tpu.matmul %12, %13, %cst_13 {dimension_numbers = #tpu.dot_dimension_numbers<[1], [0], [0], [1], [0, 0, 1, 1], [], []>} : vector<8x128xf32>, vector<128x128xf32>, vector<8x128xf32> -> vector<8x128xf32>
    %c0_14 = arith.constant 0 : index
    %c0_15 = arith.constant 0 : index
    %15 = vector.load %arg7[%c0_14, %c0_15] : memref<1x128xf32, #tpu.memory_space<vmem>>, vector<1x128xf32>
    %16 = vector.broadcast %15 : vector<1x128xf32> to vector<8x128xf32>
    %17 = arith.addf %14, %16 : vector<8x128xf32>
    %cst_16 = arith.constant dense<0xFF800000> : vector<8xf32>
    %18 = vector.multi_reduction <maximumf>, %17, %cst_16 [1] : vector<8x128xf32> to vector<8xf32>
    %19 = vector.shape_cast %18 : vector<8xf32> to vector<8x1xf32>
    %20 = vector.broadcast %19 : vector<8x1xf32> to vector<8x128xf32>
    %21 = arith.subf %17, %20 : vector<8x128xf32>
    %22 = math.exp %21 : vector<8x128xf32>
    %cst_17 = arith.constant dense<0.000000e+00> : vector<8xf32>
    %23 = vector.multi_reduction <add>, %22, %cst_17 [1] : vector<8x128xf32> to vector<8xf32>
    %24 = vector.shape_cast %23 : vector<8xf32> to vector<8x1xf32>
    %25 = tpu.reciprocal %24 {approx = true} : vector<8x1xf32> -> vector<8x1xf32>
    %26 = vector.broadcast %25 : vector<8x1xf32> to vector<8x128xf32>
    %27 = arith.mulf %22, %26 : vector<8x128xf32>
    %28 = vector.extract_strided_slice %27 {offsets = [0, 0], sizes = [8, 2], strides = [1, 1]} : vector<8x128xf32> to vector<8x2xf32>
    %c0_18 = arith.constant 0 : index
    %c0_19 = arith.constant 0 : index
    %29 = vector.load %arg8[%c0_18, %c0_19] : memref<8x2xf32, #tpu.memory_space<vmem>>, vector<8x2xf32>
    tpu.vector_store %arg8[%c0_18, %c0_19], %28 {strides = array<i32>} : memref<8x2xf32, #tpu.memory_space<vmem>>, vector<8x2xf32>,
    return
  }
  func.func @transform_0(%arg0: i32) -> (i32, i32) {
    %c0_i32 = arith.constant 0 : i32
    %c0_i32_0 = arith.constant 0 : i32
    return %arg0, %c0_i32 : i32, i32
  }
  func.func @transform_1(%arg0: i32) -> (i32, i32) {
    %c0_i32 = arith.constant 0 : i32
    %c0_i32_0 = arith.constant 0 : i32
    %c0_i32_1 = arith.constant 0 : i32
    return %c0_i32, %c0_i32_0 : i32, i32
  }
  func.func @transform_2(%arg0: i32) -> (i32, i32) {
    %c0_i32 = arith.constant 0 : i32
    %c0_i32_0 = arith.constant 0 : i32
    %c0_i32_1 = arith.constant 0 : i32
    return %c0_i32, %c0_i32_0 : i32, i32
  }
  func.func @transform_3(%arg0: i32) -> (i32, i32) {
    %c0_i32 = arith.constant 0 : i32
    %c0_i32_0 = arith.constant 0 : i32
    %c0_i32_1 = arith.constant 0 : i32
    return %c0_i32, %c0_i32_0 : i32, i32
  }
  func.func @transform_4(%arg0: i32) -> (i32, i32) {
    %c0_i32 = arith.constant 0 : i32
    %c0_i32_0 = arith.constant 0 : i32
    %c0_i32_1 = arith.constant 0 : i32
    return %c0_i32, %c0_i32_0 : i32, i32
  }
  func.func @transform_5(%arg0: i32) -> (i32, i32) {
    %c0_i32 = arith.constant 0 : i32
    %c0_i32_0 = arith.constant 0 : i32
    %c0_i32_1 = arith.constant 0 : i32
    return %c0_i32, %c0_i32_0 : i32, i32
  }
  func.func @transform_6(%arg0: i32) -> (i32, i32) {
    %c0_i32 = arith.constant 0 : i32
    %c0_i32_0 = arith.constant 0 : i32
    %c0_i32_1 = arith.constant 0 : i32
    return %c0_i32, %c0_i32_0 : i32, i32
  }
  func.func @transform_7(%arg0: i32) -> (i32, i32) {
    %c0_i32 = arith.constant 0 : i32
    %c0_i32_0 = arith.constant 0 : i32
    return %arg0, %c0_i32 : i32, i32
  }
}

</mosaic_0001>

<bundles_post_ra>
// kernel: tpu_custom_call.1
= control target key start
LH: loop header
LB: loop body
LE: loop exit
PB: predicated region body
PF: predicated region fallthrough
CT: control target
= control target key end

     0   :  { %12 = vsyncpa [#allocation3], 0  ;;  %s772_s0 = inlined_call_operand.hbm [shape: f32[8,32], index: 0, kind: input, shape index: {}]   ;;  %s773_s1 = inlined_call_operand.hbm [shape: f32[32,256], index: 1, kind: input, shape index: {}]   ;;  %s774_s2 = inlined_call_operand.vmem [shape: f32[1,256], index: 2, kind: input, shape index: {}]   ;;  %s775_s3 = inlined_call_operand.hbm [shape: f32[256,128], index: 3, kind: input, shape index: {}]   ;;  %s776_s4 = inlined_call_operand.vmem [shape: f32[1,128], index: 4, kind: input, shape index: {}]   ;;  %s777_s5 = inlined_call_operand.hbm [shape: f32[128,128], index: 5, kind: input, shape index: {}]   ;;  %s778_s6 = inlined_call_operand.vmem [shape: f32[1,128], index: 6, kind: input, shape index: {}]   ;;  %s779_s7 = inlined_call_operand.vmem [shape: f32[8,2], index: 7, kind: output, shape index: {}]  }
   0x1   :  { %13 = vsyncpa [#allocation5], 0 }
   0x2   :  { %14 = vsyncpa [#allocation8], 0  ;;  %s659_s24 = smov [#allocation4]   ;;  %s565_s28 = scalar_lea.hbm %s773_s1, 1024 }
   0x3   :  { %s30_s25 = sshll.u32 %s659_s24, 4  ;;  %p566_p0 = scmp.ne.s32.totalorder %s773_s1, %s565_s28  ;;  %s31_s25 = int_to_ptr.vmem [resolvable:$true] %s30_s25 }
   0x4   :  { %p569_p1 = scmp.lt.u32.totalorder %s565_s28, %s773_s1 }
   0x6   :  { %p571_p2 = pnand %p569_p1, %p566_p0 }
   0x8   :  { %574 = shalt.err (!%p571_p2)
}
   0x9   :  { %s575_s10 = scalar_lea.vmem %s31_s25, 1024  ;;  %p580_p4 = scmp.lt.s32.totalorder %s31_s25, %s31_s25 }
   0xa   :  { %p576_p3 = scmp.ne.s32.totalorder %s31_s25, %s575_s10  ;;  %p581_p5 = scmp.lt.s32.totalorder %s575_s10, %s575_s10 }
   0xc   :  { %p582_p6 = por %p581_p5, %p580_p4 }
   0xe   :  { %p583_p7 = pnand %p582_p6, %p576_p3 }
  0x10   :  { %586 = shalt.err (!%p583_p7)
}
  0x11   :  { %s660_s11 = smov 256   ;;  %s661_s12 = smov 16  }
  0x12   :  { %36 = dma.hbm_to_vmem [thread:$0]  %s773_s1, 1024, %s31_s25, [#allocation5], %s660_s11, %s660_s11, %s661_s12  }
  0x13   :  { %s662_s15 = smov [#allocation2]   ;;  %s663_s17 = smov [#allocation6]  }
  0x14   :  { %s21_s16 = sshll.u32 %s662_s15, 4  ;;  %s44_s18 = sshll.u32 %s663_s17, 4  ;;  %s22_s16 = int_to_ptr.vmem [resolvable:$true] %s21_s16  ;;  %s45_s18 = int_to_ptr.vmem [resolvable:$true] %s44_s18 }
  0x15   :  { %s587_s21 = scalar_lea.hbm %s772_s0, 128 }
  0x16   :  { %p588_p8 = scmp.ne.s32.totalorder %s772_s0, %s587_s21  ;;  %p591_p9 = scmp.lt.u32.totalorder %s587_s21, %s772_s0 }
  0x18   :  { %p593_p10 = pnand %p591_p9, %p588_p8 }
  0x1a   :  { %596 = shalt.err (!%p593_p10)
}
  0x1b   :  { %s597_s1 = scalar_lea.vmem %s22_s16, 128  ;;  %p602_p12 = scmp.lt.s32.totalorder %s22_s16, %s22_s16 }
  0x1c   :  { %p598_p11 = scmp.ne.s32.totalorder %s22_s16, %s597_s1  ;;  %p603_p13 = scmp.lt.s32.totalorder %s597_s1, %s597_s1 }
  0x1e   :  { %p604_p0 = por %p603_p13, %p602_p12 }
  0x20   :  { %p605_p1 = pnand %p604_p0, %p598_p11 }
  0x22   :  { %608 = shalt.err (!%p605_p1)
}
  0x23   :  { %24 = dma.hbm_to_vmem [thread:$0]  %s772_s0, 128, %s22_s16, [#allocation3]  }
  0x24   :  { %s609_s30 = scalar_lea.hbm %s775_s3, 4096 }
  0x25   :  { %p610_p2 = scmp.ne.s32.totalorder %s775_s3, %s609_s30  ;;  %p613_p3 = scmp.lt.u32.totalorder %s609_s30, %s775_s3 }
  0x27   :  { %p615_p4 = pnand %p613_p3, %p610_p2 }
  0x29   :  { %618 = shalt.err (!%p615_p4)
}
  0x2a   :  { %s619_s12 = scalar_lea.vmem %s45_s18, 4096  ;;  %p624_p6 = scmp.lt.s32.totalorder %s45_s18, %s45_s18 }
  0x2b   :  { %p620_p5 = scmp.ne.s32.totalorder %s45_s18, %s619_s12  ;;  %p625_p7 = scmp.lt.s32.totalorder %s619_s12, %s619_s12 }
  0x2d   :  { %p626_p8 = por %p625_p7, %p624_p6 }
  0x2f   :  { %p627_p9 = pnand %p626_p8, %p620_p5 }
  0x31   :  { %630 = shalt.err (!%p627_p9)
}
  0x32   :  { %s664_s0 = smov 128   ;;  %s665_s13 = smov 8  }
  0x33   :  { %50 = dma.hbm_to_vmem [thread:$0]  %s775_s3, 4096, %s45_s18, [#allocation5], %s664_s0, %s664_s0, %s665_s13  }
  0x34   :  { %s666_s16 = smov [#allocation7]   ;;  %s631_s21 = scalar_lea.hbm %s777_s5, 2048 }
  0x35   :  { %s58_s17 = sshll.u32 %s666_s16, 4  ;;  %p632_p10 = scmp.ne.s32.totalorder %s777_s5, %s631_s21  ;;  %s59_s17 = int_to_ptr.vmem [resolvable:$true] %s58_s17 }
  0x36   :  { %p635_p11 = scmp.lt.u32.totalorder %s631_s21, %s777_s5 }
  0x38   :  { %p637_p12 = pnand %p635_p11, %p632_p10 }
  0x3a   :  { %640 = shalt.err (!%p637_p12)
}
  0x3b   :  { %s641_s1 = scalar_lea.vmem %s59_s17, 2048  ;;  %p646_p0 = scmp.lt.s32.totalorder %s59_s17, %s59_s17 }
  0x3c   :  { %p642_p13 = scmp.ne.s32.totalorder %s59_s17, %s641_s1  ;;  %p647_p1 = scmp.lt.s32.totalorder %s641_s1, %s641_s1 }
  0x3e   :  { %p648_p2 = por %p647_p1, %p646_p0 }
  0x40   :  { %p649_p3 = pnand %p648_p2, %p642_p13 }
  0x42   :  { %652 = shalt.err (!%p649_p3)
}
  0x43   :  { %64 = dma.hbm_to_vmem [thread:$0]  %s777_s5, 2048, %s59_s17, [#allocation8], %s664_s0, %s664_s0, %s665_s13  }
  0x44   :  { %653 = dma.done.wait [#allocation3], 128  }
  0x45   :  { %654 = vsyncadd [#allocation3], 4294967168 }
  0x46   :  { %655 = dma.done.wait [#allocation5], 5120  }
  0x47   :  { %656 = vsyncadd [#allocation5], 4294962176 }
  0x48   :  { %657 = dma.done.wait [#allocation8], 2048  }
  0x49   :  { %658 = vsyncadd [#allocation8], 4294965248  ;;  %v667_v0 = vmov 0.0   ;;  %v81_v1 = vld [vmem:[#allocation4 + $0x8] sm:$0xff]  ;;  %v83_v2 = vld [vmem:[#allocation4 + $0x18] sm:$0xff]  ;;  %vm100_vm0 = vcmask 261120  }
  0x4a   :  { %168 = vmatprep.mubr.f32.mxu0 %v667_v0  ;;  %v80_v3 = vld [vmem:[#allocation4] sm:$0xff]  ;;  %v486_v4 = vpack.c.bf16 %v83_v2, %v81_v1  ;;  %v82_v5 = vld [vmem:[#allocation4 + $0x10] sm:$0xff]  ;;  %v85_v6 = vld [vmem:[#allocation4 + $0x28] sm:$0xff]  ;;  %v668_v2 = vmov 0.0|0.0   ;;  %vm669_vm1 = vmmov 0   ;;  %vm387_vm2 = vcmask 15360  }
  0x4b   :  { %v87_v7 = vld [vmem:[#allocation4 + $0x38] sm:$0xff]  ;;  %v488_v8 = vpack.c.bf16 %v82_v5, %v80_v3  ;;  %v84_v10 = vld [vmem:[#allocation4 + $0x20] sm:$0xff]  ;;  %v86_v11 = vld [vmem:[#allocation4 + $0x30] sm:$0xff] }
  0x4c   :  { %v490_v9 = vpack.c.bf16 %v87_v7, %v85_v6  ;;  %487 = vmatprep.subr.bf16.mxu0 %v486_v4  ;;  %v191_v12 = vld [vmem:[#allocation6 + $0x80] sm:$0xff]  ;;  %v192_v13 = vld [vmem:[#allocation6 + $0x88] sm:$0xff]  ;;  %v492_v15 = vpack.c.bf16 %v86_v11, %v84_v10  ;;  %v193_v18 = vld [vmem:[#allocation6 + $0x90] sm:$0xff] }
  0x4d   :  { %v175_v14 = vld [vmem:[#allocation6] sm:$0xff]  ;;  %489 = vmatpush1.bf16.msra.mxu0 %v488_v8  ;;  %v494_v16 = vpack.c.bf16 %v192_v13, %v191_v12  ;;  %v176_v17 = vld [vmem:[#allocation6 + $0x8] sm:$0xff]  ;;  %v194_v19 = vld [vmem:[#allocation6 + $0x98] sm:$0xff] }
  0x4e   :  { %491 = vmatprep.subr.bf16.mxu0 %v490_v9  ;;  %v496_v20 = vpack.c.bf16 %v176_v17, %v175_v14  ;;  %v498_v21 = vpack.c.bf16 %v194_v19, %v193_v18  ;;  %v177_v22 = vld [vmem:[#allocation6 + $0x10] sm:$0xff]  ;;  %v178_v23 = vld [vmem:[#allocation6 + $0x18] sm:$0xff]  ;;  %v195_v24 = vld [vmem:[#allocation6 + $0xa0] sm:$0xff]  ;;  %v90_v18 = vlaneseq }
  0x4f   :  { %495 = vmatprep.subr.bf16.mxu1 %v494_v16  ;;  %v196_v25 = vld [vmem:[#allocation6 + $0xa8] sm:$0xff]  ;;  %v500_v26 = vpack.c.bf16 %v178_v23, %v177_v22  ;;  %v79_v27 = vld [vmem:[#allocation2] sm:$0xff]  ;;  %v179_v29 = vld [vmem:[#allocation6 + $0x20] sm:$0xff] }
  0x50   :  { %497 = vmatpush3.bf16.msra.mxu1 %v496_v20  ;;  %v502_v28 = vpack.c.bf16 %v196_v25, %v195_v24  ;;  %v180_v30 = vld [vmem:[#allocation6 + $0x28] sm:$0xff]  ;;  %v197_v31 = vld [vmem:[#allocation6 + $0xb0] sm:$0xff]  ;;  %v198_v32 = vld [vmem:[#allocation6 + $0xb8] sm:$0xff]  ;;  %v91_v19 = vshrl.u32 %v90_v18, 7 }
  0x51   :  { %493 = vmatpush1.bf16.msra.mxu0 %v492_v15  ;;  %499 = vmatprep.subr.bf16.mxu1 %v498_v21  ;;  %v504_v33 = vpack.c.bf16 %v180_v30, %v179_v29  ;;  %v506_v34 = vpack.c.bf16 %v198_v32, %v197_v31  ;;  %v181_v35 = vld [vmem:[#allocation6 + $0x30] sm:$0xff]  ;;  %v182_v36 = vld [vmem:[#allocation6 + $0x38] sm:$0xff]  ;;  %v199_v37 = vld [vmem:[#allocation6 + $0xc0] sm:$0xff] }
  0x52   :  { %v200_v38 = vld [vmem:[#allocation6 + $0xc8] sm:$0xff]  ;;  %v508_v39 = vpack.c.bf16 %v182_v36, %v181_v35  ;;  %v183_v41 = vld [vmem:[#allocation6 + $0x40] sm:$0xff]  ;;  %v201_v43 = vld [vmem:[#allocation6 + $0xd0] sm:$0xff]  ;;  %526 = vmatprep.subr.bf16.mxu0 %v668_v2  ;;  %v96_v20 = vsub.s32 1, %v91_v19  ;;  %v92_v22 = vsub.s32 0, %v91_v19 }
  0x53   :  { %v510_v40 = vpack.c.bf16 %v200_v38, %v199_v37  ;;  %v184_v42 = vld [vmem:[#allocation6 + $0x48] sm:$0xff]  ;;  %v202_v44 = vld [vmem:[#allocation6 + $0xd8] sm:$0xff]  ;;  %v185_v47 = vld [vmem:[#allocation6 + $0x50] sm:$0xff] }
  0x54   :  { %396 = vmatmul.mubr.msk.f32.vlgmr.msra.gmra.mrb[0].mxu0 %vm100_vm0, %v79_v27  ;;  %501 = vmatpush3.bf16.msra.mxu1 %v500_v26  ;;  %v512_v45 = vpack.c.bf16 %v184_v42, %v183_v41  ;;  %v514_v46 = vpack.c.bf16 %v202_v44, %v201_v43  ;;  %v186_v48 = vld [vmem:[#allocation6 + $0x58] sm:$0xff]  ;;  %v203_v49 = vld [vmem:[#allocation6 + $0xe0] sm:$0xff]  ;;  %v204_v50 = vld [vmem:[#allocation6 + $0xe8] sm:$0xff] }
  0x55   :  { %503 = vmatprep.subr.bf16.mxu1 %v502_v28  ;;  %v516_v51 = vpack.c.bf16 %v186_v48, %v185_v47  ;;  %v518_v52 = vpack.c.bf16 %v204_v50, %v203_v49  ;;  %v187_v53 = vld [vmem:[#allocation6 + $0x60] sm:$0xff]  ;;  %v188_v54 = vld [vmem:[#allocation6 + $0x68] sm:$0xff]  ;;  %v205_v56 = vld [vmem:[#allocation6 + $0xf0] sm:$0xff]  ;;  %483 = vmatprep.mubr.msk.f32.mxu0 %vm669_vm1, %v667_v0 }
  0x56   :  { %v520_v55 = vpack.c.bf16 %v188_v54, %v187_v53  ;;  %v206_v57 = vld [vmem:[#allocation6 + $0xf8] sm:$0xff]  ;;  %v189_v59 = vld [vmem:[#allocation6 + $0x70] sm:$0xff]  ;;  %v285_v62 = vld [vmem:[#allocation7] sm:$0xff] }
  0x57   :  { %v522_v58 = vpack.c.bf16 %v206_v57, %v205_v56  ;;  %v190_v60 = vld [vmem:[#allocation6 + $0x78] sm:$0xff]  ;;  %v286_v63 = vld [vmem:[#allocation7 + $0x8] sm:$0xff]  ;;  %v287_v1 = vld [vmem:[#allocation7 + $0x10] sm:$0xff] }
  0x58   :  { %505 = vmatpush3.bf16.msra.mxu1 %v504_v33  ;;  %v524_v61 = vpack.c.bf16 %v190_v60, %v189_v59  ;;  %v527_v3 = vpack.c.bf16 %v286_v63, %v285_v62  ;;  %v288_v4 = vld [vmem:[#allocation7 + $0x18] sm:$0xff]  ;;  %v289_v6 = vld [vmem:[#allocation7 + $0x20] sm:$0xff]  ;;  %v290_v7 = vld [vmem:[#allocation7 + $0x28] sm:$0xff] }
  0x59   :  { %507 = vmatprep.subr.bf16.mxu1 %v506_v34  ;;  %v530_v5 = vpack.c.bf16 %v288_v4, %v287_v1  ;;  %v533_v8 = vpack.c.bf16 %v290_v7, %v289_v6  ;;  %v291_v9 = vld [vmem:[#allocation7 + $0x30] sm:$0xff]  ;;  %v292_v10 = vld [vmem:[#allocation7 + $0x38] sm:$0xff]  ;;  %v293_v12 = vld [vmem:[#allocation7 + $0x40] sm:$0xff] }
  0x5a   :  { %528 = vmatpush3.bf16.msra.mxu0 %v527_v3  ;;  %v536_v11 = vpack.c.bf16 %v292_v10, %v291_v9  ;;  %v294_v13 = vld [vmem:[#allocation7 + $0x48] sm:$0xff]  ;;  %v295_v15 = vld [vmem:[#allocation7 + $0x50] sm:$0xff]  ;;  %v296_v16 = vld [vmem:[#allocation7 + $0x58] sm:$0xff] }
  0x5b   :  { %529 = vmatprep.subr.bf16.mxu0 %v668_v2  ;;  %v539_v14 = vpack.c.bf16 %v294_v13, %v293_v12  ;;  %v542_v17 = vpack.c.bf16 %v296_v16, %v295_v15  ;;  %v88_v21 = vld [vmem:[%s774_s2] sm:$0x3]  ;;  %v297_v29 = vld [vmem:[#allocation7 + $0x60] sm:$0xff]  ;;  %v298_v30 = vld [vmem:[#allocation7 + $0x68] sm:$0xff] }
  0x5c   :  { %509 = vmatpush3.bf16.msra.mxu1 %v508_v39  ;;  %v97_v23 = vrot.slane %v88_v21, %v96_v20  ;;  %v93_v24 = vrot.slane %v88_v21, %v92_v22  ;;  %v545_v31 = vpack.c.bf16 %v298_v30, %v297_v29  ;;  %v299_v32 = vld [vmem:[#allocation7 + $0x70] sm:$0xff]  ;;  %v300_v33 = vld [vmem:[#allocation7 + $0x78] sm:$0xff] }
  0x5d   :  { %511 = vmatprep.subr.bf16.mxu1 %v510_v40  ;;  %v548_v34 = vpack.c.bf16 %v300_v33, %v299_v32  ;;  %v397_v36 = vld [vmem:[%s776_s4] ss:$0 sm:$0xff] }
  0x5e   :  { %531 = vmatpush3.bf16.msra.mxu0 %v530_v5  ;;  %v398_v41 = vld [vmem:[%s778_s6] ss:$0 sm:$0xff] }
  0x5f   :  { %532 = vmatprep.subr.bf16.mxu0 %v668_v2 }
  0x60   :  { %513 = vmatpush3.bf16.msra.mxu1 %v512_v45 }
  0x61   :  { %515 = vmatprep.subr.bf16.mxu1 %v514_v46 }
  0x62   :  { %534 = vmatpush3.bf16.msra.mxu0 %v533_v8 }
  0x63   :  { %535 = vmatprep.subr.bf16.mxu0 %v668_v2 }
  0x64   :  { %517 = vmatpush3.bf16.msra.mxu1 %v516_v51 }
  0x65   :  { %519 = vmatprep.subr.bf16.mxu1 %v518_v52 }
  0x66   :  { %537 = vmatpush3.bf16.msra.mxu0 %v536_v11 }
  0x67   :  { %538 = vmatprep.subr.bf16.mxu0 %v668_v2 }
  0x68   :  { %521 = vmatpush3.bf16.msra.mxu1 %v520_v55 }
  0x69   :  { %523 = vmatprep.subr.bf16.mxu1 %v522_v58 }
  0x6a   :  { %540 = vmatpush3.bf16.msra.mxu0 %v539_v14 }
  0x6b   :  { %541 = vmatprep.subr.bf16.mxu0 %v668_v2 }
  0x6c   :  { %525 = vmatpush3.bf16.msra.mxu1 %v524_v61 }
  0x6e   :  { %543 = vmatpush3.bf16.msra.mxu0 %v542_v17 }
  0x6f   :  { %544 = vmatprep.subr.bf16.mxu0 %v668_v2 }
  0x72   :  { %546 = vmatpush3.bf16.msra.mxu0 %v545_v31 }
  0x73   :  { %547 = vmatprep.subr.bf16.mxu0 %v668_v2 }
  0x76   :  { %549 = vmatpush3.bf16.msra.mxu0 %v548_v34 }
 0x127   :  { %v170_v25 = vpop.f32.mrb[0].mxu0 }
 0x128   :  { %v172_v26 = vpop.f32.mrb[1].mxu0  ;;  %v171_v28 = vadd.f32 %v170_v25, %v93_v24 }
 0x129   :  { %v173_v27 = vadd.f32 %v172_v26, %v97_v23 }
 0x12b   :  { %278 = vmatprep.mubr.f32.mxu1 %v173_v27 }
 0x12c   :  { %279 = vmatmul.mubr.f32.vlgmr.msra.gmra.mrb[0].mxu1 %v171_v28 }
 0x1ff   :  { %v431_v35 = vpop.f32.mrb[0].mxu1 }
 0x200   :  { %v432_v37 = vpop.f32.mrb[1].mxu1 }
 0x201   :  { %v433_v38 = vadd.f32 %v432_v37, %v431_v35 }
 0x203   :  { %v281_v39 = vadd.f32 %v433_v38, %v397_v36 }
 0x205   :  { %v284_v40 = vmax.f32 %v281_v39, 0.0 }
 0x207   :  { %484 = vmatmul.mubr.f32.vlgmr.msra.gmra.mrb[2].mxu0 %v284_v40 }
 0x2da   :  { %v374_v42 = vpop.f32.mrb[2].mxu0 }
 0x2db   :  { %v375_v43 = vadd.f32 %v398_v41, %v374_v42  ;;  %v485_v44 = vpop.f32.mrb[3].mxu0 }
 0x2dd   :  { %378 = vmax.xlane.f32.xlu0 %v375_v43 }
 0x36a   :  { %v379_v45 = vpop.xlane.xlu0 %378 }
 0x36b   :  { %v380_v0 = vsub.f32 %v375_v43, %v379_v45 }
 0x36d   :  { %v381_v46 = vmul.f32 1.442695, %v380_v0 }
 0x36f   :  { %561 = vpow2.f32 %v381_v46 }
 0x379   :  { %v562_v47 = vpop.eup %561 }
 0x37a   :  { %383 = vadd.xlane.f32.xlu0 %v562_v47 }
 0x407   :  { %v384_v48 = vpop.xlane.xlu0 %383 }
 0x408   :  { %563 = vrcp.f32 %v384_v48 }
 0x412   :  { %v564_v49 = vpop.eup %563 }
 0x413   :  { %v386_v50 = vmul.f32 %v564_v49, %v562_v47 }
 0x415   :  { %388 = vst.msk [vmem:[%s779_s7] sm:$0xff] %vm387_vm2, %v386_v50 }
 0x416   :  { %393 = vsyncpa [#allocation3], 1 }
 0x417   :  { %394 = vsyncpa [#allocation5], 1 }
 0x418   :  { %395 = vsyncpa [#allocation8], 1 }

// kernel: tpu_custom_call.1
= control target key start
LH: loop header
LB: loop body
LE: loop exit
PB: predicated region body
PF: predicated region fallthrough
CT: control target
= control target key end

     0   :  { %12 = vsyncpa [#allocation3], 0  ;;  %s772_s0 = inlined_call_operand.hbm [shape: f32[8,32], index: 0, kind: input, shape index: {}]   ;;  %s773_s1 = inlined_call_operand.hbm [shape: f32[32,256], index: 1, kind: input, shape index: {}]   ;;  %s774_s2 = inlined_call_operand.vmem [shape: f32[1,256], index: 2, kind: input, shape index: {}]   ;;  %s775_s3 = inlined_call_operand.hbm [shape: f32[256,128], index: 3, kind: input, shape index: {}]   ;;  %s776_s4 = inlined_call_operand.vmem [shape: f32[1,128], index: 4, kind: input, shape index: {}]   ;;  %s777_s5 = inlined_call_operand.hbm [shape: f32[128,128], index: 5, kind: input, shape index: {}]   ;;  %s778_s6 = inlined_call_operand.vmem [shape: f32[1,128], index: 6, kind: input, shape index: {}]   ;;  %s779_s7 = inlined_call_operand.vmem [shape: f32[8,2], index: 7, kind: output, shape index: {}]  }
   0x1   :  { %13 = vsyncpa [#allocation5], 0 }
   0x2   :  { %14 = vsyncpa [#allocation8], 0  ;;  %s659_s24 = smov [#allocation4]   ;;  %s565_s28 = scalar_lea.hbm %s773_s1, 1024 }
   0x3   :  { %s30_s25 = sshll.u32 %s659_s24, 4  ;;  %p566_p0 = scmp.ne.s32.totalorder %s773_s1, %s565_s28  ;;  %s31_s25 = int_to_ptr.vmem [resolvable:$true] %s30_s25 }
   0x4   :  { %p569_p1 = scmp.lt.u32.totalorder %s565_s28, %s773_s1 }
   0x6   :  { %p571_p2 = pnand %p569_p1, %p566_p0 }
   0x8   :  { %574 = shalt.err (!%p571_p2)
}
   0x9   :  { %s575_s10 = scalar_lea.vmem %s31_s25, 1024  ;;  %p580_p4 = scmp.lt.s32.totalorder %s31_s25, %s31_s25 }
   0xa   :  { %p576_p3 = scmp.ne.s32.totalorder %s31_s25, %s575_s10  ;;  %p581_p5 = scmp.lt.s32.totalorder %s575_s10, %s575_s10 }
   0xc   :  { %p582_p6 = por %p581_p5, %p580_p4 }
   0xe   :  { %p583_p7 = pnand %p582_p6, %p576_p3 }
  0x10   :  { %586 = shalt.err (!%p583_p7)
}
  0x11   :  { %s660_s11 = smov 256   ;;  %s661_s12 = smov 16  }
  0x12   :  { %36 = dma.hbm_to_vmem [thread:$0]  %s773_s1, 1024, %s31_s25, [#allocation5], %s660_s11, %s660_s11, %s661_s12  }
  0x13   :  { %s662_s15 = smov [#allocation2]   ;;  %s663_s17 = smov [#allocation6]  }
  0x14   :  { %s21_s16 = sshll.u32 %s662_s15, 4  ;;  %s44_s18 = sshll.u32 %s663_s17, 4  ;;  %s22_s16 = int_to_ptr.vmem [resolvable:$true] %s21_s16  ;;  %s45_s18 = int_to_ptr.vmem [resolvable:$true] %s44_s18 }
  0x15   :  { %s587_s21 = scalar_lea.hbm %s772_s0, 128 }
  0x16   :  { %p588_p8 = scmp.ne.s32.totalorder %s772_s0, %s587_s21  ;;  %p591_p9 = scmp.lt.u32.totalorder %s587_s21, %s772_s0 }
  0x18   :  { %p593_p10 = pnand %p591_p9, %p588_p8 }
  0x1a   :  { %596 = shalt.err (!%p593_p10)
}
  0x1b   :  { %s597_s1 = scalar_lea.vmem %s22_s16, 128  ;;  %p602_p12 = scmp.lt.s32.totalorder %s22_s16, %s22_s16 }
  0x1c   :  { %p598_p11 = scmp.ne.s32.totalorder %s22_s16, %s597_s1  ;;  %p603_p13 = scmp.lt.s32.totalorder %s597_s1, %s597_s1 }
  0x1e   :  { %p604_p0 = por %p603_p13, %p602_p12 }
  0x20   :  { %p605_p1 = pnand %p604_p0, %p598_p11 }
  0x22   :  { %608 = shalt.err (!%p605_p1)
}
  0x23   :  { %24 = dma.hbm_to_vmem [thread:$0]  %s772_s0, 128, %s22_s16, [#allocation3]  }
  0x24   :  { %s609_s30 = scalar_lea.hbm %s775_s3, 4096 }
  0x25   :  { %p610_p2 = scmp.ne.s32.totalorder %s775_s3, %s609_s30  ;;  %p613_p3 = scmp.lt.u32.totalorder %s609_s30, %s775_s3 }
  0x27   :  { %p615_p4 = pnand %p613_p3, %p610_p2 }
  0x29   :  { %618 = shalt.err (!%p615_p4)
}
  0x2a   :  { %s619_s12 = scalar_lea.vmem %s45_s18, 4096  ;;  %p624_p6 = scmp.lt.s32.totalorder %s45_s18, %s45_s18 }
  0x2b   :  { %p620_p5 = scmp.ne.s32.totalorder %s45_s18, %s619_s12  ;;  %p625_p7 = scmp.lt.s32.totalorder %s619_s12, %s619_s12 }
  0x2d   :  { %p626_p8 = por %p625_p7, %p624_p6 }
  0x2f   :  { %p627_p9 = pnand %p626_p8, %p620_p5 }
  0x31   :  { %630 = shalt.err (!%p627_p9)
}
  0x32   :  { %s664_s0 = smov 128   ;;  %s665_s13 = smov 8  }
  0x33   :  { %50 = dma.hbm_to_vmem [thread:$0]  %s775_s3, 4096, %s45_s18, [#allocation5], %s664_s0, %s664_s0, %s665_s13  }
  0x34   :  { %s666_s16 = smov [#allocation7]   ;;  %s631_s21 = scalar_lea.hbm %s777_s5, 2048 }
  0x35   :  { %s58_s17 = sshll.u32 %s666_s16, 4  ;;  %p632_p10 = scmp.ne.s32.totalorder %s777_s5, %s631_s21  ;;  %s59_s17 = int_to_ptr.vmem [resolvable:$true] %s58_s17 }
  0x36   :  { %p635_p11 = scmp.lt.u32.totalorder %s631_s21, %s777_s5 }
  0x38   :  { %p637_p12 = pnand %p635_p11, %p632_p10 }
  0x3a   :  { %640 = shalt.err (!%p637_p12)
}
  0x3b   :  { %s641_s1 = scalar_lea.vmem %s59_s17, 2048  ;;  %p646_p0 = scmp.lt.s32.totalorder %s59_s17, %s59_s17 }
  0x3c   :  { %p642_p13 = scmp.ne.s32.totalorder %s59_s17, %s641_s1  ;;  %p647_p1 = scmp.lt.s32.totalorder %s641_s1, %s641_s1 }
  0x3e   :  { %p648_p2 = por %p647_p1, %p646_p0 }
  0x40   :  { %p649_p3 = pnand %p648_p2, %p642_p13 }
  0x42   :  { %652 = shalt.err (!%p649_p3)
}
  0x43   :  { %64 = dma.hbm_to_vmem [thread:$0]  %s777_s5, 2048, %s59_s17, [#allocation8], %s664_s0, %s664_s0, %s665_s13  }
  0x44   :  { %653 = dma.done.wait [#allocation3], 128  }
  0x45   :  { %654 = vsyncadd [#allocation3], 4294967168 }
  0x46   :  { %655 = dma.done.wait [#allocation5], 5120  }
  0x47   :  { %656 = vsyncadd [#allocation5], 4294962176 }
  0x48   :  { %657 = dma.done.wait [#allocation8], 2048  }
  0x49   :  { %658 = vsyncadd [#allocation8], 4294965248  ;;  %v667_v0 = vmov 0.0   ;;  %v81_v1 = vld [vmem:[#allocation4 + $0x8] sm:$0xff]  ;;  %v83_v2 = vld [vmem:[#allocation4 + $0x18] sm:$0xff]  ;;  %vm100_vm0 = vcmask 261120  }
  0x4a   :  { %168 = vmatprep.mubr.f32.mxu0 %v667_v0  ;;  %v80_v3 = vld [vmem:[#allocation4] sm:$0xff]  ;;  %v486_v4 = vpack.c.bf16 %v83_v2, %v81_v1  ;;  %v82_v5 = vld [vmem:[#allocation4 + $0x10] sm:$0xff]  ;;  %v85_v6 = vld [vmem:[#allocation4 + $0x28] sm:$0xff]  ;;  %v668_v2 = vmov 0.0|0.0   ;;  %vm669_vm1 = vmmov 0   ;;  %vm387_vm2 = vcmask 15360  }
  0x4b   :  { %v87_v7 = vld [vmem:[#allocation4 + $0x38] sm:$0xff]  ;;  %v488_v8 = vpack.c.bf16 %v82_v5, %v80_v3  ;;  %v84_v10 = vld [vmem:[#allocation4 + $0x20] sm:$0xff]  ;;  %v86_v11 = vld [vmem:[#allocation4 + $0x30] sm:$0xff] }
  0x4c   :  { %v490_v9 = vpack.c.bf16 %v87_v7, %v85_v6  ;;  %487 = vmatprep.subr.bf16.mxu0 %v486_v4  ;;  %v191_v12 = vld [vmem:[#allocation6 + $0x80] sm:$0xff]  ;;  %v192_v13 = vld [vmem:[#allocation6 + $0x88] sm:$0xff]  ;;  %v492_v15 = vpack.c.bf16 %v86_v11, %v84_v10  ;;  %v193_v18 = vld [vmem:[#allocation6 + $0x90] sm:$0xff] }
  0x4d   :  { %v175_v14 = vld [vmem:[#allocation6] sm:$0xff]  ;;  %489 = vmatpush1.bf16.msra.mxu0 %v488_v8  ;;  %v494_v16 = vpack.c.bf16 %v192_v13, %v191_v12  ;;  %v176_v17 = vld [vmem:[#allocation6 + $0x8] sm:$0xff]  ;;  %v194_v19 = vld [vmem:[#allocation6 + $0x98] sm:$0xff] }
  0x4e   :  { %491 = vmatprep.subr.bf16.mxu0 %v490_v9  ;;  %v496_v20 = vpack.c.bf16 %v176_v17, %v175_v14  ;;  %v498_v21 = vpack.c.bf16 %v194_v19, %v193_v18  ;;  %v177_v22 = vld [vmem:[#allocation6 + $0x10] sm:$0xff]  ;;  %v178_v23 = vld [vmem:[#allocation6 + $0x18] sm:$0xff]  ;;  %v195_v24 = vld [vmem:[#allocation6 + $0xa0] sm:$0xff]  ;;  %v90_v18 = vlaneseq }
  0x4f   :  { %495 = vmatprep.subr.bf16.mxu1 %v494_v16  ;;  %v196_v25 = vld [vmem:[#allocation6 + $0xa8] sm:$0xff]  ;;  %v500_v26 = vpack.c.bf16 %v178_v23, %v177_v22  ;;  %v79_v27 = vld [vmem:[#allocation2] sm:$0xff]  ;;  %v179_v29 = vld [vmem:[#allocation6 + $0x20] sm:$0xff] }
  0x50   :  { %497 = vmatpush3.bf16.msra.mxu1 %v496_v20  ;;  %v502_v28 = vpack.c.bf16 %v196_v25, %v195_v24  ;;  %v180_v30 = vld [vmem:[#allocation6 + $0x28] sm:$0xff]  ;;  %v197_v31 = vld [vmem:[#allocation6 + $0xb0] sm:$0xff]  ;;  %v198_v32 = vld [vmem:[#allocation6 + $0xb8] sm:$0xff]  ;;  %v91_v19 = vshrl.u32 %v90_v18, 7 }
  0x51   :  { %493 = vmatpush1.bf16.msra.mxu0 %v492_v15  ;;  %499 = vmatprep.subr.bf16.mxu1 %v498_v21  ;;  %v504_v33 = vpack.c.bf16 %v180_v30, %v179_v29  ;;  %v506_v34 = vpack.c.bf16 %v198_v32, %v197_v31  ;;  %v181_v35 = vld [vmem:[#allocation6 + $0x30] sm:$0xff]  ;;  %v182_v36 = vld [vmem:[#allocation6 + $0x38] sm:$0xff]  ;;  %v199_v37 = vld [vmem:[#allocation6 + $0xc0] sm:$0xff] }
  0x52   :  { %v200_v38 = vld [vmem:[#allocation6 + $0xc8] sm:$0xff]  ;;  %v508_v39 = vpack.c.bf16 %v182_v36, %v181_v35  ;;  %v183_v41 = vld [vmem:[#allocation6 + $0x40] sm:$0xff]  ;;  %v201_v43 = vld [vmem:[#allocation6 + $0xd0] sm:$0xff]  ;;  %526 = vmatprep.subr.bf16.mxu0 %v668_v2  ;;  %v96_v20 = vsub.s32 1, %v91_v19  ;;  %v92_v22 = vsub.s32 0, %v91_v19 }
  0x53   :  { %v510_v40 = vpack.c.bf16 %v200_v38, %v199_v37  ;;  %v184_v42 = vld [vmem:[#allocation6 + $0x48] sm:$0xff]  ;;  %v202_v44 = vld [vmem:[#allocation6 + $0xd8] sm:$0xff]  ;;  %v185_v47 = vld [vmem:[#allocation6 + $0x50] sm:$0xff] }
  0x54   :  { %396 = vmatmul.mubr.msk.f32.vlgmr.msra.gmra.mrb[0].mxu0 %vm100_vm0, %v79_v27  ;;  %501 = vmatpush3.bf16.msra.mxu1 %v500_v26  ;;  %v512_v45 = vpack.c.bf16 %v184_v42, %v183_v41  ;;  %v514_v46 = vpack.c.bf16 %v202_v44, %v201_v43  ;;  %v186_v48 = vld [vmem:[#allocation6 + $0x58] sm:$0xff]  ;;  %v203_v49 = vld [vmem:[#allocation6 + $0xe0] sm:$0xff]  ;;  %v204_v50 = vld [vmem:[#allocation6 + $0xe8] sm:$0xff] }
  0x55   :  { %503 = vmatprep.subr.bf16.mxu1 %v502_v28  ;;  %v516_v51 = vpack.c.bf16 %v186_v48, %v185_v47  ;;  %v518_v52 = vpack.c.bf16 %v204_v50, %v203_v49  ;;  %v187_v53 = vld [vmem:[#allocation6 + $0x60] sm:$0xff]  ;;  %v188_v54 = vld [vmem:[#allocation6 + $0x68] sm:$0xff]  ;;  %v205_v56 = vld [vmem:[#allocation6 + $0xf0] sm:$0xff]  ;;  %483 = vmatprep.mubr.msk.f32.mxu0 %vm669_vm1, %v667_v0 }
  0x56   :  { %v520_v55 = vpack.c.bf16 %v188_v54, %v187_v53  ;;  %v206_v57 = vld [vmem:[#allocation6 + $0xf8] sm:$0xff]  ;;  %v189_v59 = vld [vmem:[#allocation6 + $0x70] sm:$0xff]  ;;  %v285_v62 = vld [vmem:[#allocation7] sm:$0xff] }
  0x57   :  { %v522_v58 = vpack.c.bf16 %v206_v57, %v205_v56  ;;  %v190_v60 = vld [vmem:[#allocation6 + $0x78] sm:$0xff]  ;;  %v286_v63 = vld [vmem:[#allocation7 + $0x8] sm:$0xff]  ;;  %v287_v1 = vld [vmem:[#allocation7 + $0x10] sm:$0xff] }
  0x58   :  { %505 = vmatpush3.bf16.msra.mxu1 %v504_v33  ;;  %v524_v61 = vpack.c.bf16 %v190_v60, %v189_v59  ;;  %v527_v3 = vpack.c.bf16 %v286_v63, %v285_v62  ;;  %v288_v4 = vld [vmem:[#allocation7 + $0x18] sm:$0xff]  ;;  %v289_v6 = vld [vmem:[#allocation7 + $0x20] sm:$0xff]  ;;  %v290_v7 = vld [vmem:[#allocation7 + $0x28] sm:$0xff] }
  0x59   :  { %507 = vmatprep.subr.bf16.mxu1 %v506_v34  ;;  %v530_v5 = vpack.c.bf16 %v288_v4, %v287_v1  ;;  %v533_v8 = vpack.c.bf16 %v290_v7, %v289_v6  ;;  %v291_v9 = vld [vmem:[#allocation7 + $0x30] sm:$0xff]  ;;  %v292_v10 = vld [vmem:[#allocation7 + $0x38] sm:$0xff]  ;;  %v293_v12 = vld [vmem:[#allocation7 + $0x40] sm:$0xff] }
  0x5a   :  { %528 = vmatpush3.bf16.msra.mxu0 %v527_v3  ;;  %v536_v11 = vpack.c.bf16 %v292_v10, %v291_v9  ;;  %v294_v13 = vld [vmem:[#allocation7 + $0x48] sm:$0xff]  ;;  %v295_v15 = vld [vmem:[#allocation7 + $0x50] sm:$0xff]  ;;  %v296_v16 = vld [vmem:[#allocation7 + $0x58] sm:$0xff] }
  0x5b   :  { %529 = vmatprep.subr.bf16.mxu0 %v668_v2  ;;  %v539_v14 = vpack.c.bf16 %v294_v13, %v293_v12  ;;  %v542_v17 = vpack.c.bf16 %v296_v16, %v295_v15  ;;  %v88_v21 = vld [vmem:[%s774_s2] sm:$0x3]  ;;  %v297_v29 = vld [vmem:[#allocation7 + $0x60] sm:$0xff]  ;;  %v298_v30 = vld [vmem:[#allocation7 + $0x68] sm:$0xff] }
  0x5c   :  { %509 = vmatpush3.bf16.msra.mxu1 %v508_v39  ;;  %v97_v23 = vrot.slane %v88_v21, %v96_v20  ;;  %v93_v24 = vrot.slane %v88_v21, %v92_v22  ;;  %v545_v31 = vpack.c.bf16 %v298_v30, %v297_v29  ;;  %v299_v32 = vld [vmem:[#allocation7 + $0x70] sm:$0xff]  ;;  %v300_v33 = vld [vmem:[#allocation7 + $0x78] sm:$0xff] }
  0x5d   :  { %511 = vmatprep.subr.bf16.mxu1 %v510_v40  ;;  %v548_v34 = vpack.c.bf16 %v300_v33, %v299_v32  ;;  %v397_v36 = vld [vmem:[%s776_s4] ss:$0 sm:$0xff] }
  0x5e   :  { %531 = vmatpush3.bf16.msra.mxu0 %v530_v5  ;;  %v398_v41 = vld [vmem:[%s778_s6] ss:$0 sm:$0xff] }
  0x5f   :  { %532 = vmatprep.subr.bf16.mxu0 %v668_v2 }
  0x60   :  { %513 = vmatpush3.bf16.msra.mxu1 %v512_v45 }
  0x61   :  { %515 = vmatprep.subr.bf16.mxu1 %v514_v46 }
  0x62   :  { %534 = vmatpush3.bf16.msra.mxu0 %v533_v8 }
  0x63   :  { %535 = vmatprep.subr.bf16.mxu0 %v668_v2 }
  0x64   :  { %517 = vmatpush3.bf16.msra.mxu1 %v516_v51 }
  0x65   :  { %519 = vmatprep.subr.bf16.mxu1 %v518_v52 }
  0x66   :  { %537 = vmatpush3.bf16.msra.mxu0 %v536_v11 }
  0x67   :  { %538 = vmatprep.subr.bf16.mxu0 %v668_v2 }
  0x68   :  { %521 = vmatpush3.bf16.msra.mxu1 %v520_v55 }
  0x69   :  { %523 = vmatprep.subr.bf16.mxu1 %v522_v58 }
  0x6a   :  { %540 = vmatpush3.bf16.msra.mxu0 %v539_v14 }
  0x6b   :  { %541 = vmatprep.subr.bf16.mxu0 %v668_v2 }
  0x6c   :  { %525 = vmatpush3.bf16.msra.mxu1 %v524_v61 }
  0x6e   :  { %543 = vmatpush3.bf16.msra.mxu0 %v542_v17 }
  0x6f   :  { %544 = vmatprep.subr.bf16.mxu0 %v668_v2 }
  0x72   :  { %546 = vmatpush3.bf16.msra.mxu0 %v545_v31 }
  0x73   :  { %547 = vmatprep.subr.bf16.mxu0 %v668_v2 }
  0x76   :  { %549 = vmatpush3.bf16.msra.mxu0 %v548_v34 }
 0x127   :  { %v170_v25 = vpop.f32.mrb[0].mxu0 }
 0x128   :  { %v172_v26 = vpop.f32.mrb[1].mxu0  ;;  %v171_v28 = vadd.f32 %v170_v25, %v93_v24 }
 0x129   :  { %v173_v27 = vadd.f32 %v172_v26, %v97_v23 }
 0x12b   :  { %278 = vmatprep.mubr.f32.mxu1 %v173_v27 }
 0x12c   :  { %279 = vmatmul.mubr.f32.vlgmr.msra.gmra.mrb[0].mxu1 %v171_v28 }
 0x1ff   :  { %v431_v35 = vpop.f32.mrb[0].mxu1 }
 0x200   :  { %v432_v37 = vpop.f32.mrb[1].mxu1 }
 0x201   :  { %v433_v38 = vadd.f32 %v432_v37, %v431_v35 }
 0x203   :  { %v281_v39 = vadd.f32 %v433_v38, %v397_v36 }
 0x205   :  { %v284_v40 = vmax.f32 %v281_v39, 0.0 }
 0x207   :  { %484 = vmatmul.mubr.f32.vlgmr.msra.gmra.mrb[2].mxu0 %v284_v40 }
 0x2da   :  { %v374_v42 = vpop.f32.mrb[2].mxu0 }
 0x2db   :  { %v375_v43 = vadd.f32 %v398_v41, %v374_v42  ;;  %v485_v44 = vpop.f32.mrb[3].mxu0 }
 0x2dd   :  { %378 = vmax.xlane.f32.xlu0 %v375_v43 }
 0x36a   :  { %v379_v45 = vpop.xlane.xlu0 %378 }
 0x36b   :  { %v380_v0 = vsub.f32 %v375_v43, %v379_v45 }
 0x36d   :  { %v381_v46 = vmul.f32 1.442695, %v380_v0 }
 0x36f   :  { %561 = vpow2.f32 %v381_v46 }
 0x379   :  { %v562_v47 = vpop.eup %561 }
 0x37a   :  { %383 = vadd.xlane.f32.xlu0 %v562_v47 }
 0x407   :  { %v384_v48 = vpop.xlane.xlu0 %383 }
 0x408   :  { %563 = vrcp.f32 %v384_v48 }
 0x412   :  { %v564_v49 = vpop.eup %563 }
 0x413   :  { %v386_v50 = vmul.f32 %v564_v49, %v562_v47 }
 0x415   :  { %388 = vst.msk [vmem:[%s779_s7] sm:$0xff] %vm387_vm2, %v386_v50 }
 0x416   :  { %393 = vsyncpa [#allocation3], 1 }
 0x417   :  { %394 = vsyncpa [#allocation5], 1 }
 0x418   :  { %395 = vsyncpa [#allocation8], 1 }

</bundles_post_ra>
